<compile_context>
chip_gen: v7x
topology: tpu7x:2x2x1
jax: 0.10.0
libtpu: 0.0.40
codegen_flags: <defaults>
</compile_context>

<pallas_src>
import math

import jax
import jax.numpy as jnp
from jax.experimental import pallas as pl
from jax.experimental.pallas import tpu as pltpu


_SMALL_FALLBACK_ELEMS = 1 << 16      # below this, let XLA fuse the add
_TARGET_TILE_BYTES = 6 << 20         # combined x+pe+out bytes per tile (~12 MiB double-buffered)
_MEGACORE_SPLIT_BYTES = 512 << 10    # only force a >=2-step grid when tiles are at least this big


def _pe_add_kernel(x_ref, pe_ref, o_ref):
    """out = x + pe, computed in f32 (matches torch's type promotion)."""
    x = x_ref[...].astype(jnp.float32)          # (TB, TS, D_l)
    pe = pe_ref[...].astype(jnp.float32)        # (TS, D_l), batch-invariant
    o_ref[...] = (x + pe[None, :, :]).astype(o_ref.dtype)


def _build_pe(S, D):
    """Sinusoidal table (f32) matching the PyTorch buffer construction (even D)."""
    position = jnp.arange(S, dtype=jnp.float32)[:, None]                       # (S, 1)
    div_term = jnp.exp(
        jnp.arange(0, D, 2, dtype=jnp.float32) * (-math.log(10000.0) / D)
    )                                                                          # (D//2,)
    angles = position * div_term                                               # (S, D//2)
    # Interleave sin/cos -> pe[:, 0::2] = sin, pe[:, 1::2] = cos
    pe = jnp.stack([jnp.sin(angles), jnp.cos(angles)], axis=-1).reshape(S, D)
    return pe  # float32


def _sublane_multiple(dtype):
    """Row-tile granularity: 8 for f32, 16 for bf16/f16, 32 for int8/fp8."""
    return max(8, 32 // jnp.dtype(dtype).itemsize)


def _round_up(x, m):
    return ((x + m - 1) // m) * m


def _pick_tiles(S_l, B, D_l, sub, bytes_per_elem):
    """Pick (TS, TB) so the combined tile stays ~<= _TARGET_TILE_BYTES."""
    row_bytes = D_l * bytes_per_elem
    max_rows = max(1, _TARGET_TILE_BYTES // row_bytes)

    if S_l <= max_rows:
        # Whole (folded) sequence fits in one tile: spend the rest on batch.
        TS = S_l
        TB = min(B, max(1, _TARGET_TILE_BYTES // max(TS * row_bytes, 1)))
    else:
        # Fixed sublane-multiple row tile; pl.cdiv grid masks the partial last block.
        TS = min(S_l, max(sub, (max_rows // sub) * sub))
        TB = 1

    # v7x megacore: a big single-step grid would run on one TensorCore only.
    tile_bytes = TB * TS * row_bytes
    if (pl.cdiv(S_l, TS) == 1 and pl.cdiv(B, TB) == 1
            and tile_bytes >= _MEGACORE_SPLIT_BYTES):
        if B >= 2:
            TB = pl.cdiv(B, 2)
        elif S_l >= 2 * sub:
            half = _round_up(pl.cdiv(S_l, 2), sub)
            if half < S_l:
                TS = half
    return TS, TB


def positional_encoding_add(x, max_len: int = 5000, *,
                            force_pallas: bool = False, donate_x: bool = False):
    """Pallas equivalent of PositionalEncoding.forward: x + pe[:, :S, :]."""
    B, S, D = x.shape
    if S > max_len:
        raise ValueError(f"sequence length {S} exceeds max_len {max_len}")
    if D % 2 != 0:
        # The PyTorch module itself fails for odd d_model; keep that behavior.
        raise ValueError("d_model must be even (matches PyTorch module behavior)")

    out_dtype = jnp.result_type(x.dtype, jnp.float32)   # torch: x + f32 buffer promotes
    pe = _build_pe(S, D)                                 # (S, D) float32

    # Small-problem fallback: launch overhead dominates, let XLA fuse it.
    if not force_pallas and x.size < _SMALL_FALLBACK_ELEMS:
        return (x + pe[None, :, :]).astype(out_dtype)

    # --- lane-dense folding: make the last (lane) dim a multiple of 128 ------
    fold = 1 if D % 128 == 0 else 128 // math.gcd(D, 128)
    S_pad = _round_up(S, fold)
    if S_pad != S:
        # Pad a few rows so the row-major fold keeps x<->pe aligned; slice after.
        # Far cheaper than masked sub-128-lane (vst.msk) stores.
        x = jnp.pad(x, ((0, 0), (0, S_pad - S), (0, 0)))
        pe = jnp.pad(pe, ((0, S_pad - S), (0, 0)))
    S_l, D_l = S_pad // fold, D * fold
    x_l = x.reshape(B, S_l, D_l)
    pe_l = pe.reshape(S_l, D_l)

    # --- tile selection -------------------------------------------------------
    sub = _sublane_multiple(x.dtype)
    bytes_per_elem = x.dtype.itemsize + 4 + jnp.dtype(out_dtype).itemsize  # x + pe(f32) + out
    TS, TB = _pick_tiles(S_l, B, D_l, sub, bytes_per_elem)
    grid = (pl.cdiv(S_l, TS), pl.cdiv(B, TB))   # batch innermost -> pe tile stays VMEM-resident

    n_elems = B * S * D
    cost = pl.CostEstimate(
        flops=n_elems,
        transcendentals=0,
        bytes_accessed=(n_elems * x.dtype.itemsize
                        + S * D * 4
                        + n_elems * jnp.dtype(out_dtype).itemsize),
    )

    io_aliases = {}
    if donate_x and jnp.dtype(out_dtype) == jnp.dtype(x.dtype):
        io_aliases = {0: 0}   # reuse x's HBM buffer for the output

    out = pl.pallas_call(
        _pe_add_kernel,
        out_shape=jax.ShapeDtypeStruct((B, S_l, D_l), out_dtype),
        grid_spec=pltpu.PrefetchScalarGridSpec(
            num_scalar_prefetch=0,
            grid=grid,
            in_specs=[
                # x: (TB, TS, D_l) tile
                pl.BlockSpec((TB, TS, D_l), lambda s, b: (b, s, 0)),
                # pe: batch-invariant (index_map ignores b) -> not re-fetched across batch
                pl.BlockSpec((TS, D_l), lambda s, b: (s, 0)),
            ],
            out_specs=pl.BlockSpec((TB, TS, D_l), lambda s, b: (b, s, 0)),
        ),
        compiler_params=pltpu.CompilerParams(
            dimension_semantics=("parallel", "parallel"),
        ),
        cost_estimate=cost,
        input_output_aliases=io_aliases,
    )(x_l, pe_l)

    out = out.reshape(B, S_pad, D)
    if S_pad != S:
        out = out[:, :S, :]
    return out


def _reference(x):
    """Pure-JAX reference mirroring the PyTorch buffer construction + promotion."""
    B, S, D = x.shape
    position = jnp.arange(S, dtype=jnp.float32)[:, None]
    div_term = jnp.exp(
        jnp.arange(0, D, 2, dtype=jnp.float32) * (-math.log(10000.0) / D)
    )
    pe = jnp.zeros((S, D), dtype=jnp.float32)
    pe = pe.at[:, 0::2].set(jnp.sin(position * div_term))
    pe = pe.at[:, 1::2].set(jnp.cos(position * div_term))
    return x + pe[None, :, :]


if __name__ == "__main__":
    key = jax.random.PRNGKey(0)

    # 1) Small shape matching the module semantics (batch=2, seq=8, d_model=32).
    #    Exercises the lane-folded (D < 128) path.
    B, S, D = 2, 8, 32
    x = jax.random.normal(key, (B, S, D), dtype=jnp.float32)
    out = jax.block_until_ready(positional_encoding_add(x, force_pallas=True))
    ref = _reference(x)
    assert out.shape == (B, S, D) and out.dtype == jnp.float32
    assert jnp.allclose(out, ref, atol=1e-5, rtol=1e-5)

    # 2) Lane-aligned shape (D multiple of 128) + donated-input alias path.
    x2 = jax.random.normal(jax.random.PRNGKey(0), (2, 128, 256), dtype=jnp.float32)
    out2 = jax.block_until_ready(positional_encoding_add(x2, force_pallas=True, donate_x=True))
    assert jnp.allclose(out2, _reference(x2), atol=1e-5, rtol=1e-5)

    # 3) Awkward S (not divisible by the fold factor) -> wrapper pad + slice path.
    x3 = jax.random.normal(jax.random.PRNGKey(1), (2, 9, 32), dtype=jnp.float32)
    out3 = jax.block_until_ready(positional_encoding_add(x3, force_pallas=True))
    assert out3.shape == (2, 9, 32)
    assert jnp.allclose(out3, _reference(x3), atol=1e-5, rtol=1e-5)

    # 4) bf16 input: output promotes to f32 exactly like the PyTorch module.
    x4 = jax.random.normal(jax.random.PRNGKey(2), (2, 16, 128), dtype=jnp.bfloat16)
    out4 = jax.block_until_ready(positional_encoding_add(x4, force_pallas=True))
    assert out4.dtype == jnp.float32
    assert jnp.allclose(out4, _reference(x4), atol=1e-5, rtol=1e-5)

    # 5) Auto path (small-problem fallback) matches as well.
    out5 = jax.block_until_ready(positional_encoding_add(x))
    assert jnp.allclose(out5, ref, atol=1e-5, rtol=1e-5)

    print("KERNEL_OK")
</pallas_src>

<mosaic_0001>
module attributes {stable_mosaic.version = 11 : i64} {
  func.func @_pe_add_kernel(%arg0: i32, %arg1: i32, %arg2: memref<2x2x128xf32, #tpu.memory_space<vmem>>, %arg3: memref<2x128xf32, #tpu.memory_space<vmem>>, %arg4: memref<2x2x128xf32, #tpu.memory_space<vmem>>) attributes {dimension_semantics = [#tpu.dimension_semantics<parallel>, #tpu.dimension_semantics<parallel>], iteration_bounds = array<i64: 1, 1>, scalar_prefetch = 0 : i64, scratch_operands = 0 : i64, tpu.core_type = #tpu.core_type<tc>, window_params = [{transform_indices = @transform_0, window_bounds = array<i64: 2, 2, 128>}, {transform_indices = @transform_1, window_bounds = array<i64: 2, 128>}, {transform_indices = @transform_2, window_bounds = array<i64: 2, 2, 128>}]} {
    %c0 = arith.constant 0 : index
    %c0_0 = arith.constant 0 : index
    %c0_1 = arith.constant 0 : index
    %0 = vector.load %arg2[%c0, %c0_0, %c0_1] : memref<2x2x128xf32, #tpu.memory_space<vmem>>, vector<2x2x128xf32>
    %c0_2 = arith.constant 0 : index
    %c0_3 = arith.constant 0 : index
    %1 = vector.load %arg3[%c0_2, %c0_3] : memref<2x128xf32, #tpu.memory_space<vmem>>, vector<2x128xf32>
    %2 = vector.shape_cast %1 : vector<2x128xf32> to vector<1x2x128xf32>
    %3 = vector.broadcast %2 : vector<1x2x128xf32> to vector<2x2x128xf32>
    %4 = arith.addf %0, %3 : vector<2x2x128xf32>
    %c0_4 = arith.constant 0 : index
    %c0_5 = arith.constant 0 : index
    %c0_6 = arith.constant 0 : index
    %5 = vector.load %arg4[%c0_4, %c0_5, %c0_6] : memref<2x2x128xf32, #tpu.memory_space<vmem>>, vector<2x2x128xf32>
    tpu.vector_store %arg4[%c0_4, %c0_5, %c0_6], %4 {strides = array<i32>} : memref<2x2x128xf32, #tpu.memory_space<vmem>>, vector<2x2x128xf32>,
    return
  }
  func.func @transform_0(%arg0: i32, %arg1: i32) -> (i32, i32, i32) {
    %c0_i32 = arith.constant 0 : i32
    %c0_i32_0 = arith.constant 0 : i32
    return %arg1, %arg0, %c0_i32 : i32, i32, i32
  }
  func.func @transform_1(%arg0: i32, %arg1: i32) -> (i32, i32) {
    %c0_i32 = arith.constant 0 : i32
    %c0_i32_0 = arith.constant 0 : i32
    return %arg0, %c0_i32 : i32, i32
  }
  func.func @transform_2(%arg0: i32, %arg1: i32) -> (i32, i32, i32) {
    %c0_i32 = arith.constant 0 : i32
    %c0_i32_0 = arith.constant 0 : i32
    return %arg1, %arg0, %c0_i32 : i32, i32, i32
  }
}

</mosaic_0001>

<bundles_post_ra>
// kernel: tpu_custom_call.1
= control target key start
LH: loop header
LB: loop body
LE: loop exit
PB: predicated region body
PF: predicated region fallthrough
CT: control target
= control target key end

     0   :  { %7 = vsyncpa [#allocation3], 0  ;;  %s154_s0 = inlined_call_operand.hbm [shape: f32[2,2,128], index: 0, kind: input, shape index: {}]   ;;  %s155_s1 = inlined_call_operand.vmem [shape: f32[2,128], index: 1, kind: input, shape index: {}]   ;;  %s156_s2 = inlined_call_operand.hbm [shape: f32[2,2,128], index: 2, kind: output, shape index: {}]  }
   0x1   :  { %8 = vsyncpa [#allocation4], 0  ;;  %s102_s9 = smov [#allocation2]   ;;  %s54_s13 = scalar_lea.hbm %s154_s0, 64 }
   0x2   :  { %s14_s10 = sshll.u32 %s102_s9, 4  ;;  %p55_p0 = scmp.ne.s32.totalorder %s154_s0, %s54_s13  ;;  %s15_s10 = int_to_ptr.vmem [resolvable:$true] %s14_s10 }
   0x3   :  { %p58_p1 = scmp.lt.u32.totalorder %s54_s13, %s154_s0 }
   0x5   :  { %p60_p2 = pnand %p58_p1, %p55_p0 }
   0x7   :  { %63 = shalt.err (!%p60_p2)
}
   0x8   :  { %s64_s18 = scalar_lea.vmem %s15_s10, 64  ;;  %p69_p4 = scmp.lt.s32.totalorder %s15_s10, %s15_s10 }
   0x9   :  { %p65_p3 = scmp.ne.s32.totalorder %s15_s10, %s64_s18  ;;  %p70_p5 = scmp.lt.s32.totalorder %s64_s18, %s64_s18 }
   0xb   :  { %p71_p6 = por %p70_p5, %p69_p4 }
   0xd   :  { %p72_p7 = pnand %p71_p6, %p65_p3 }
   0xf   :  { %75 = shalt.err (!%p72_p7)
}
  0x10   :  { %s103_s19 = smov 32   ;;  %s104_s20 = smov 2  }
  0x11   :  { %20 = dma.hbm_to_vmem [thread:$0]  %s154_s0, 64, %s15_s10, [#allocation3], %s103_s19, %s103_s19, %s104_s20  }
  0x12   :  { %98 = dma.done.wait [#allocation3], 64  }
  0x13   :  { %99 = vsyncadd [#allocation3], 4294967232  ;;  %s105_s23 = smov [#allocation5]   ;;  %v26_v0 = vld [vmem:[#allocation2] sm:$0x3] }
  0x14   :  { %s38_s24 = sshll.u32 %s105_s23, 4  ;;  %v28_v1 = vld [vmem:[%s155_s1] sm:$0x3]  ;;  %v27_v2 = vld [vmem:[#allocation2 + $0x2] sm:$0x3]  ;;  %s39_s24 = int_to_ptr.vmem [resolvable:$true] %s38_s24 }
  0x15   :  { %v29_v3 = vadd.f32 %v28_v1, %v26_v0  ;;  %v30_v4 = vadd.f32 %v28_v1, %v27_v2  ;;  %s76_s27 = scalar_lea.vmem %s39_s24, 64  ;;  %p81_p9 = scmp.lt.s32.totalorder %s39_s24, %s39_s24 }
  0x16   :  { %p77_p8 = scmp.ne.s32.totalorder %s39_s24, %s76_s27  ;;  %p82_p10 = scmp.lt.s32.totalorder %s76_s27, %s76_s27 }
  0x17   :  { %31 = vst [vmem:[#allocation5] sm:$0x3] %v29_v3  ;;  %32 = vst [vmem:[#allocation5 + $0x2] sm:$0x3] %v30_v4 }
  0x18   :  { %p83_p11 = por %p82_p10, %p81_p9 }
  0x1a   :  { %p84_p12 = pnand %p83_p11, %p77_p8 }
  0x1c   :  { %87 = shalt.err (!%p84_p12)
}
  0x1d   :  { %s88_s29 = scalar_lea.hbm %s156_s2, 64 }
  0x1e   :  { %p89_p13 = scmp.ne.s32.totalorder %s156_s2, %s88_s29  ;;  %p92_p0 = scmp.lt.u32.totalorder %s88_s29, %s156_s2 }
  0x20   :  { %p94_p1 = pnand %p92_p0, %p89_p13 }
  0x22   :  { %97 = shalt.err (!%p94_p1)
}
  0x23   :  { %44 = dma.vmem_to_hbm [thread:$0]  %s39_s24, 64, %s156_s2, [#allocation4], %s103_s19, %s103_s19, %s104_s20  }
  0x24   :  { %100 = dma.done.wait [#allocation4], 64  }
  0x25   :  { %101 = vsyncadd [#allocation4], 4294967232 }
  0x26   :  { %48 = vsyncpa [#allocation3], 1 }
  0x27   :  { %49 = vsyncpa [#allocation4], 1 }

</bundles_post_ra>
